<compile_context>
chip_gen: v6e
topology: v6e:2x2x1
jax: 0.10.0
libtpu: 0.0.40
codegen_flags: <defaults>
</compile_context>

<pallas_src>
import jax
import jax.numpy as jnp
from jax import lax
from jax.experimental import pallas as pl
from jax.experimental.pallas import tpu as pltpu


def _round_up(x: int, m: int) -> int:
    return ((x + m - 1) // m) * m


def _pick_tile(size_pad: int, cap: int) -> int:
    """Largest multiple of 128 that divides size_pad and is <= cap."""
    t = (min(cap, size_pad) // 128) * 128
    t = max(t, 128)
    while size_pad % t != 0:
        t -= 128
    return t


def _device_caps():
    """(tm/tn cap, vmem_limit_bytes) tuned per TPU generation."""
    try:
        kind = jax.devices()[0].device_kind.lower()
    except Exception:  # pragma: no cover - defensive
        kind = ""
    if "v7" in kind:
        # 64 MiB VMEM per TensorCore; already compute-bound at 1024 tiles.
        return 1024, 48 * 1024 * 1024
    if ("v5" in kind) or ("v6" in kind):
        # 128 MiB VMEM; bigger output tiles cut input DMA for f32 matmul.
        return 2048, 96 * 1024 * 1024
    return 1024, 48 * 1024 * 1024  # unknown generation: conservative


# ----------------------------------------------------------------------------
# Kernels
# ----------------------------------------------------------------------------
def _ip_kernel_small(x_ref, y_ref, o_ref):
    # Single block covering the whole (tiny) problem: x @ y.T in one shot.
    o_ref[...] = lax.dot_general(
        x_ref[...],
        y_ref[...],
        dimension_numbers=(((1,), (1,)), ((), ())),
        preferred_element_type=jnp.float32,
    ).astype(o_ref.dtype)


def _ip_kernel_accum_out(x_ref, y_ref, o_ref):
    # f32 output: accumulate directly into the resident output tile (block
    # index (i, j) is constant across the k axis, which is "arbitrary").
    @pl.when(pl.program_id(2) == 0)
    def _():
        o_ref[...] = jnp.zeros_like(o_ref)

    o_ref[...] += lax.dot_general(
        x_ref[...],
        y_ref[...],
        dimension_numbers=(((1,), (1,)), ((), ())),
        preferred_element_type=jnp.float32,
    )


def _ip_kernel_scratch(x_ref, y_ref, o_ref, acc_ref):
    # Non-f32 output: keep an f32 VMEM accumulator, cast on the last k step.
    @pl.when(pl.program_id(2) == 0)
    def _():
        acc_ref[...] = jnp.zeros_like(acc_ref)

    acc_ref[...] += lax.dot_general(
        x_ref[...],
        y_ref[...],
        dimension_numbers=(((1,), (1,)), ((), ())),
        preferred_element_type=jnp.float32,
    )

    @pl.when(pl.program_id(2) == pl.num_programs(2) - 1)
    def _():
        o_ref[...] = acc_ref[...].astype(o_ref.dtype)


# ----------------------------------------------------------------------------
# Wrapper
# ----------------------------------------------------------------------------
def inner_product(inp: jax.Array, *, use_bf16: bool = False) -> jax.Array:
    """Equivalent of InnerProduct.forward(input) for a (N, 2*in_dim) input."""
    n, two_d = inp.shape
    assert two_d % 2 == 0, "feature dim must be even (chunked in half)"
    d = two_d // 2
    out_dtype = inp.dtype

    # ---- Small-problem fast path: no padding, no staging, one block. ----
    if n <= 128 and d <= 256:
        x_half = inp[:, :d]
        y_half = inp[:, d:]
        if use_bf16:
            x_half = x_half.astype(jnp.bfloat16)
            y_half = y_half.astype(jnp.bfloat16)
        xy = pl.pallas_call(
            _ip_kernel_small,
            out_shape=jax.ShapeDtypeStruct((n, n), out_dtype),
        )(x_half, y_half)
        return xy.reshape(-1)

    # ---- Tiled MXU path. ----
    cap_mn, vmem_limit = _device_caps()
    cap_k = 512

    n_pad = _round_up(n, 128)
    d_pad = _round_up(d, 128)

    tm = _pick_tile(n_pad, cap_mn)
    tn = tm
    # Guarantee >= 2 blocks along a parallel axis so the second TensorCore
    # (v7x) / megacore sharding has something to do.
    if n_pad // tm == 1 and n_pad >= 256:
        tn = _pick_tile(n_pad, max(128, tm // 2))
    tk = _pick_tile(d_pad, cap_k)

    aligned = (n_pad == n) and (d_pad == d)
    compute_dtype = jnp.bfloat16 if use_bf16 else inp.dtype

    if aligned and not use_bf16:
        # No copy: both halves are read straight out of `inp` via index_map
        # column offsets (x at column-block k, y at column-block k + d//tk).
        x_arg = inp
        y_arg = inp
        y_off = d_pad // tk
    else:
        # One fused pad per half; padded K columns are zero (contribute 0 to
        # the dot), padded N rows are sliced away afterwards.
        x_half = inp[:, :d].astype(compute_dtype)
        y_half = inp[:, d:].astype(compute_dtype)
        if not aligned:
            x_half = jnp.pad(x_half, ((0, n_pad - n), (0, d_pad - d)))
            y_half = jnp.pad(y_half, ((0, n_pad - n), (0, d_pad - d)))
        x_arg, y_arg = x_half, y_half
        y_off = 0

    k_blocks = d_pad // tk
    grid = (n_pad // tm, n_pad // tn, k_blocks)

    x_spec = pl.BlockSpec((tm, tk), lambda i, j, k: (i, k))
    y_spec = pl.BlockSpec((tn, tk), lambda i, j, k, _off=y_off: (j, k + _off))
    out_spec = pl.BlockSpec((tm, tn), lambda i, j, k: (i, j))

    if out_dtype == jnp.float32:
        kernel = _ip_kernel_accum_out
        scratch = []
    else:
        kernel = _ip_kernel_scratch
        scratch = [pltpu.VMEM((tm, tn), jnp.float32)]

    xy = pl.pallas_call(
        kernel,
        out_shape=jax.ShapeDtypeStruct((n_pad, n_pad), out_dtype),
        grid=grid,
        in_specs=[x_spec, y_spec],
        out_specs=out_spec,
        scratch_shapes=scratch,
        compiler_params=pltpu.CompilerParams(
            dimension_semantics=("parallel", "parallel", "arbitrary"),
            vmem_limit_bytes=vmem_limit,
        ),
    )(x_arg, y_arg)

    if n_pad != n:
        xy = xy[:n, :n]
    # Glue: flatten (same as torch.flatten).
    return xy.reshape(-1)


# ----------------------------------------------------------------------------
# Self-test
# ----------------------------------------------------------------------------
if __name__ == "__main__":
    key = jax.random.PRNGKey(0)

    # 1) Typical module use: N=8 nodes, in_dim=32 -> small fast path.
    N, in_dim = 8, 32
    inp = jax.random.normal(key, (N, 2 * in_dim), dtype=jnp.float32)
    out = inner_product(inp)
    jax.block_until_ready(out)

    x_h, y_h = inp[:, :in_dim], inp[:, in_dim:]
    ref = jnp.einsum("nd,md->nm", x_h, y_h,
                     precision=lax.Precision.HIGHEST).reshape(-1)
    assert out.shape == (N * N,)
    assert jnp.allclose(out, ref, atol=1e-4, rtol=1e-4)

    # 2) Aligned tiled case: no-copy in-place reads of both halves,
    #    K-accumulation loop and the >=2-parallel-blocks split (grid (1,2,2)).
    N2, in_dim2 = 256, 1024
    inp2 = jax.random.normal(jax.random.PRNGKey(1), (N2, 2 * in_dim2),
                             dtype=jnp.float32)
    out2 = inner_product(inp2)
    jax.block_until_ready(out2)

    x2, y2 = inp2[:, :in_dim2], inp2[:, in_dim2:]
    ref2 = jnp.einsum("nd,md->nm", x2, y2,
                      precision=lax.Precision.HIGHEST).reshape(-1)
    assert out2.shape == (N2 * N2,)
    assert jnp.allclose(out2, ref2, atol=1e-2, rtol=1e-3)

    # 3) Ragged case: exercises the jnp.pad staging + post-slice path.
    N3, in_dim3 = 200, 300
    inp3 = jax.random.normal(jax.random.PRNGKey(2), (N3, 2 * in_dim3),
                             dtype=jnp.float32)
    out3 = inner_product(inp3)
    jax.block_until_ready(out3)

    x3, y3 = inp3[:, :in_dim3], inp3[:, in_dim3:]
    ref3 = jnp.einsum("nd,md->nm", x3, y3,
                      precision=lax.Precision.HIGHEST).reshape(-1)
    assert out3.shape == (N3 * N3,)
    assert jnp.allclose(out3, ref3, atol=1e-2, rtol=1e-3)

    print("KERNEL_OK")
</pallas_src>

<mosaic_0001>
module attributes {stable_mosaic.version = 11 : i64} {
  func.func @_ip_kernel_small(%arg0: memref<8x32xf32, #tpu.memory_space<vmem>>, %arg1: memref<8x32xf32, #tpu.memory_space<vmem>>, %arg2: memref<8x8xf32, #tpu.memory_space<vmem>>) attributes {dimension_semantics = [], scalar_prefetch = 0 : i64, scratch_operands = 0 : i64, tpu.core_type = #tpu.core_type<tc>} {
    %c0 = arith.constant 0 : index
    %c0_0 = arith.constant 0 : index
    %0 = vector.load %arg0[%c0, %c0_0] : memref<8x32xf32, #tpu.memory_space<vmem>>, vector<8x32xf32>
    %c0_1 = arith.constant 0 : index
    %c0_2 = arith.constant 0 : index
    %1 = vector.load %arg1[%c0_1, %c0_2] : memref<8x32xf32, #tpu.memory_space<vmem>>, vector<8x32xf32>
    %cst = arith.constant dense<0.000000e+00> : vector<8x8xf32>
    %2 = tpu.matmul %0, %1, %cst {dimension_numbers = #tpu.dot_dimension_numbers<[1], [1], [0], [0], [0, 0, 1, 0], [], []>} : vector<8x32xf32>, vector<8x32xf32>, vector<8x8xf32> -> vector<8x8xf32>
    %c0_3 = arith.constant 0 : index
    %c0_4 = arith.constant 0 : index
    %3 = vector.load %arg2[%c0_3, %c0_4] : memref<8x8xf32, #tpu.memory_space<vmem>>, vector<8x8xf32>
    tpu.vector_store %arg2[%c0_3, %c0_4], %2 {strides = array<i32>} : memref<8x8xf32, #tpu.memory_space<vmem>>, vector<8x8xf32>,
    return
  }
}

</mosaic_0001>

<bundles_post_ra>
// kernel: tpu_custom_call.1
= control target key start
LH: loop header
LB: loop body
LE: loop exit
PB: predicated region body
PF: predicated region fallthrough
CT: control target
= control target key end

     0   :  { %7 = vsyncpa [#allocation3], 0  ;;  %s242_s0 = inlined_call_operand.hbm [shape: f32[8,32], index: 0, kind: input, shape index: {}]   ;;  %s243_s1 = inlined_call_operand.hbm [shape: f32[8,32], index: 1, kind: input, shape index: {}]   ;;  %s244_s2 = inlined_call_operand.hbm [shape: f32[8,8], index: 2, kind: output, shape index: {}]  }
   0x1   :  { %8 = vsyncpa [#allocation6], 0 }
   0x2   :  { %9 = vsyncpa [#allocation4], 0  ;;  %s213_s9 = smov [#allocation2]   ;;  %s214_s11 = smov [#allocation5]  }
   0x3   :  { %s16_s10 = sshll.u32 %s213_s9, 4  ;;  %s26_s12 = sshll.u32 %s214_s11, 4  ;;  %s17_s10 = int_to_ptr.vmem [resolvable:$true] %s16_s10  ;;  %s27_s12 = int_to_ptr.vmem [resolvable:$true] %s26_s12 }
   0x4   :  { %s155_s13 = scalar_lea.vmem %s17_s10, 128  ;;  %p160_p1 = scmp.lt.s32.totalorder %s17_s10, %s17_s10 }
   0x5   :  { %p156_p0 = scmp.ne.s32.totalorder %s17_s10, %s155_s13  ;;  %p161_p2 = scmp.lt.s32.totalorder %s155_s13, %s155_s13 }
   0x7   :  { %p162_p3 = por %p161_p2, %p160_p1 }
   0x9   :  { %p163_p4 = pnand %p162_p3, %p156_p0 }
   0xb   :  { %166 = shalt.err (!%p163_p4)
}
   0xc   :  { %19 = dma.hbm_to_vmem [thread:$0]  %s242_s0, 128, %s17_s10, [#allocation3]  }
   0xd   :  { %s175_s16 = scalar_lea.vmem %s27_s12, 128  ;;  %p180_p6 = scmp.lt.s32.totalorder %s27_s12, %s27_s12 }
   0xe   :  { %p176_p5 = scmp.ne.s32.totalorder %s27_s12, %s175_s16  ;;  %p181_p7 = scmp.lt.s32.totalorder %s175_s16, %s175_s16 }
  0x10   :  { %p182_p8 = por %p181_p7, %p180_p6 }
  0x12   :  { %p183_p9 = pnand %p182_p8, %p176_p5 }
  0x14   :  { %186 = shalt.err (!%p183_p9)
}
  0x15   :  { %29 = dma.hbm_to_vmem [thread:$0]  %s243_s1, 128, %s27_s12, [#allocation6]  }
  0x16   :  { %207 = dma.done.wait [#allocation3], 128  }
  0x17   :  { %208 = vsyncadd [#allocation3], 4294967168 }
  0x18   :  { %209 = dma.done.wait [#allocation6], 128  }
  0x19   :  { %210 = vsyncadd [#allocation6], 4294967168  ;;  %v215_v0 = vmov 0.0   ;;  %vm216_vm0 = vmmov 0   ;;  %vm38_vm1 = vcmask 261120   ;;  %v37_v1 = vld [vmem:[#allocation5] sm:$0xff] }
  0x1a   :  { %137 = vmatprep.subr.mxu0 %v215_v0  ;;  %139 = vmatprep.mubr.msk.f32.mxu0 %vm216_vm0, %v215_v0  ;;  %v36_v2 = vld [vmem:[#allocation2] sm:$0xff]  ;;  %s217_s0 = smov [#allocation7]   ;;  %vm115_vm2 = vcmask 64512  }
  0x1b   :  { %138 = vmatpush3.xpose.msk.msra.mxu0 %vm38_vm1, %v37_v1  ;;  %s123_s19 = sshll.u32 %s217_s0, 4  ;;  %s124_s19 = int_to_ptr.vmem [resolvable:$true] %s123_s19 }
  0x1c   :  { %s187_s1 = scalar_lea.vmem %s124_s19, 128  ;;  %p192_p11 = scmp.lt.s32.totalorder %s124_s19, %s124_s19 }
  0x1d   :  { %p188_p10 = scmp.ne.s32.totalorder %s124_s19, %s187_s1  ;;  %p193_p12 = scmp.lt.s32.totalorder %s187_s1, %s187_s1 }
  0x1e   :  { %140 = vmatmul.mubr.msk.f32.vlgmr.msra.gmra.mxu0 %vm38_vm1, %v36_v2 }
  0x1f   :  { %p194_p13 = por %p193_p12, %p192_p11 }
  0x21   :  { %p195_p0 = pnand %p194_p13, %p188_p10 }
  0xde   :  { %v111_v3 = vpop.f32.mrf.mxu0 }
  0xdf   :  { %116 = vst.msk [vmem:[#allocation7] sm:$0xff] %vm115_vm2, %v111_v3 }
  0xe0   :  { %v141_v4 = vpop.f32.mrf.mxu0 }
  0xe1   :  { %198 = shalt.err (!%p195_p0)
}
  0xe2   :  { %126 = dma.vmem_to_hbm [thread:$0]  %s124_s19, 128, %s244_s2, [#allocation4]  }
  0xe3   :  { %211 = dma.done.wait [#allocation4], 128  }
  0xe4   :  { %212 = vsyncadd [#allocation4], 4294967168 }
  0xe5   :  { %130 = vsyncpa [#allocation3], 1 }
  0xe6   :  { %131 = vsyncpa [#allocation6], 1 }
  0xe7   :  { %132 = vsyncpa [#allocation4], 1 }

</bundles_post_ra>
